<compile_context>
chip_gen: v6e
topology: v6e:2x2x1
jax: 0.10.0
libtpu: 0.0.40
codegen_flags: <defaults>
</compile_context>

<pallas_src>
import functools
import math

import jax
import jax.numpy as jnp
from jax.experimental import pallas as pl
from jax.experimental.pallas import tpu as pltpu


# ----------------------------------------------------------------------------
# Position helpers (get_xpos / get_ypos are not defined in the source file).
# TODO(synk): exact get_xpos/get_ypos not provided in source; assuming a square
#             sqrt(n_patch) x sqrt(n_patch) patch grid with 1-based indices.
# ----------------------------------------------------------------------------
def get_xpos(n_patch, start_idx=1):
    side = int(round(math.sqrt(n_patch)))
    cols = jnp.arange(start_idx, side + start_idx, dtype=jnp.float32)
    return jnp.tile(cols, side)            # column index varies fastest


def get_ypos(n_patch, start_idx=1):
    side = int(round(math.sqrt(n_patch)))
    rows = jnp.arange(start_idx, side + start_idx, dtype=jnp.float32)
    return jnp.repeat(rows, side)          # row index varies slowest


def generate_rope1d(pos, emb_half):
    """pos: (n_patch, 1) -> (sin, cos), each (seq_len, emb_half)."""
    pos = jnp.pad(pos, ((1, 0), (0, 0)))                               # CLS row = 0
    theta = -2.0 * jnp.arange(1, emb_half // 2 + 1, dtype=jnp.float32) / emb_half
    theta = jnp.repeat(theta, 2)                                       # repeat_interleave(.., 2)
    theta = jnp.power(10000.0, theta)                                  # (emb_half,)
    val = pos * theta                                                  # (S, emb_half)
    return jnp.sin(val), jnp.cos(val)


def build_rope_tables(seq_len, head_dim, n_head, scaling):
    """Sign-folded, head-tiled f32 RoPE tables.

    Returns (tables, raw) where tables has shape (6, S, C=head_dim*n_head):
      rows 0..2 = (cos, sin_a, sin_b) * scaling   (applied to q)
      rows 3..5 = (cos, sin_a, sin_b)             (applied to k)
    so that  out[j] = x[j]*cos[j] + x[j+1]*sin_a[j] + x[j-1]*sin_b[j]
    reproduces pairwise 2D RoPE; wrap / pair-boundary / head-boundary terms are
    zeroed by the tables, so full-width lane shifts are safe.
    """
    emb_half = head_dim // 2
    assert emb_half % 2 == 0, "head_dim must be a multiple of 4 for pairwise RoPE"
    n_patch = seq_len - 1
    side = int(round(math.sqrt(n_patch)))
    assert side * side == n_patch, "seq_len - 1 must be a square patch grid"

    x_pos = get_xpos(n_patch, start_idx=1).reshape(-1, 1)
    y_pos = get_ypos(n_patch, start_idx=1).reshape(-1, 1)
    x_sin, x_cos = generate_rope1d(x_pos, emb_half)
    y_sin, y_cos = generate_rope1d(y_pos, emb_half)

    sin = jnp.concatenate([x_sin, y_sin], axis=-1)          # (S, head_dim)
    cos = jnp.concatenate([x_cos, y_cos], axis=-1)          # (S, head_dim)

    parity = jnp.arange(head_dim, dtype=jnp.int32) % 2
    zero = jnp.zeros_like(sin)
    sin_a = jnp.where(parity == 0, -sin, zero)   # multiplies x[j+1]  (even lanes)
    sin_b = jnp.where(parity == 1, sin, zero)    # multiplies x[j-1]  (odd lanes)

    cos_f = jnp.tile(cos, (1, n_head))           # (S, C): heads packed along lanes
    sa_f = jnp.tile(sin_a, (1, n_head))
    sb_f = jnp.tile(sin_b, (1, n_head))
    tables = jnp.stack([cos_f * scaling, sa_f * scaling, sb_f * scaling,
                        cos_f, sa_f, sb_f]).astype(jnp.float32)
    return tables, (x_sin, x_cos, y_sin, y_cos)


# ----------------------------------------------------------------------------
# Probe: is pltpu.roll available, and does it follow jnp.roll semantics?
# Falls back to concatenate-based shifts if not ("disabled").
# ----------------------------------------------------------------------------
def _probe_roll_mode():
    def kern(x_ref, o_ref):
        o_ref[...] = pltpu.roll(x_ref[...], shift=1, axis=1)

    x = jnp.tile(jnp.arange(128, dtype=jnp.float32)[None, :], (8, 1))
    try:
        y = pl.pallas_call(kern,
                           out_shape=jax.ShapeDtypeStruct((8, 128), jnp.float32))(x)
        y = jax.block_until_ready(y)
        if float(y[0, 0]) == 127.0 and float(y[0, 1]) == 0.0:
            return "jnp"        # elements move toward higher indices (jnp.roll)
        if float(y[0, 0]) == 1.0 and float(y[0, 1]) == 2.0:
            return "flipped"
        return "disabled"
    except Exception:
        return "disabled"


def _prefer_multi_step_grid():
    # v7x has two TensorCores per chip: keep an even >=2-step grid so the
    # "parallel" axis can be split.  v5e/v6e have one TC, where the grid is a
    # serial loop -> prefer the single largest block.
    try:
        kind = jax.devices()[0].device_kind.lower()
    except Exception:
        return False
    return ("v7" in kind) or ("7x" in kind)


# ----------------------------------------------------------------------------
# Fused RoPE + attention kernel.  One grid step = `batch_block` batches.
# qkv_ref: (TB, S, 3C) lane-dense; tbl_ref: (6, S, C) f32; o_ref: (TB, S, C).
# ----------------------------------------------------------------------------
def _rope_attention_kernel(qkv_ref, tbl_ref, o_ref, *, n_head, roll_mode):
    TB, S, three_c = qkv_ref.shape
    C = three_c // 3
    D = C // n_head

    qkv = qkv_ref[...]
    # bf16 MXU feeding (f32 accumulation) when activations are bf16.
    mxu_dtype = jnp.bfloat16 if qkv.dtype == jnp.bfloat16 else jnp.float32

    q = qkv[:, :, 0 * C:1 * C].astype(jnp.float32)     # (TB, S, C) lane-dense
    k = qkv[:, :, 1 * C:2 * C].astype(jnp.float32)
    v = qkv[:, :, 2 * C:3 * C].astype(mxu_dtype)

    def shifted(x):
        # x_next[j] = x[j+1], x_prev[j] = x[j-1] (with wrap; wrap / head-boundary
        # contributions are zeroed by the sign-folded sin tables).
        if roll_mode == "disabled":
            x_next = jnp.concatenate([x[..., 1:], x[..., :1]], axis=-1)
            x_prev = jnp.concatenate([x[..., -1:], x[..., :-1]], axis=-1)
        else:
            next_s, prev_s = (C - 1, 1) if roll_mode == "jnp" else (1, C - 1)
            x_next = pltpu.roll(x, shift=next_s, axis=2)
            x_prev = pltpu.roll(x, shift=prev_s, axis=2)
        return x_next, x_prev

    def rope(x, cos, sa, sb):
        x_next, x_prev = shifted(x)
        return x * cos + x_next * sa + x_prev * sb

    # Softmax scaling is pre-folded into the q-side tables (rows 0..2).
    q = rope(q, tbl_ref[0], tbl_ref[1], tbl_ref[2]).astype(mxu_dtype)
    k = rope(k, tbl_ref[3], tbl_ref[4], tbl_ref[5]).astype(mxu_dtype)

    # Per-head attention (static unroll keeps each dot in the proven
    # single-leading-batch-dim form).  Heads are packed back into one
    # lane-dense (TB, S, C) slab so the store is a full-width vst.
    outs = []
    for h in range(n_head):
        sl = slice(h * D, (h + 1) * D)
        qh, kh, vh = q[:, :, sl], k[:, :, sl], v[:, :, sl]
        s = jnp.einsum('bqd,bkd->bqk', qh, kh, preferred_element_type=jnp.float32)
        s = s - jnp.max(s, axis=-1, keepdims=True)
        p = jnp.exp(s)
        inv = pl.reciprocal(jnp.sum(p, axis=-1, keepdims=True), approx=True)
        attn = (p * inv).astype(mxu_dtype)
        outs.append(jnp.einsum('bqk,bkd->bqd', attn, vh,
                               preferred_element_type=jnp.float32))
    o_ref[...] = jnp.concatenate(outs, axis=-1).astype(o_ref.dtype)


def _pick_batch_block(B, S, C, n_head, itemsize, prefer_multi_step):
    """Batches per grid step, sized against a v7x-safe scoped-VMEM budget,
    accounting for double-buffered in/out blocks and f32 temporaries."""
    budget = 24 * 1024 * 1024
    table_bytes = 2 * 6 * S * C * 4                    # (6,S,C) f32, double-buffered
    io = 2 * (S * 3 * C + S * C) * itemsize            # qkv in + out blocks, x2 buffers
    f32_work = 6 * S * C * 4                           # q/k/v f32 + shift temps + out
    scores = 4 * S * S * 4                             # s + p (sequential head loop), margin
    per_batch = io + f32_work + scores
    divisors = [t for t in range(1, B + 1) if B % t == 0]
    fits = [t for t in divisors if table_bytes + t * per_batch <= budget] or [1]
    if prefer_multi_step and B >= 2:
        multi = [t for t in fits if (B // t) >= 2 and (B // t) % 2 == 0]
        if multi:
            return max(multi)
    return max(fits)


def fused_rope_attention(qkv, tables, *, n_head, batch_block, roll_mode):
    """qkv: (B, S, 3C) lane-dense; tables: (6, S, C) f32 -> (B, S, C)."""
    B, S, three_c = qkv.shape
    C = three_c // 3
    if C % 128 != 0:
        roll_mode = "disabled"       # keep lane rolls on full 128-lane tiles only
    grid = (B // batch_block,)

    kernel = functools.partial(_rope_attention_kernel, n_head=n_head,
                               roll_mode=roll_mode)
    return pl.pallas_call(
        kernel,
        out_shape=jax.ShapeDtypeStruct((B, S, C), qkv.dtype),
        grid_spec=pltpu.PrefetchScalarGridSpec(
            num_scalar_prefetch=0,
            grid=grid,
            in_specs=[pl.BlockSpec((batch_block, S, three_c), lambda i: (i, 0, 0)),
                      pl.BlockSpec(tables.shape, lambda i: (0, 0, 0))],
            out_specs=pl.BlockSpec((batch_block, S, C), lambda i: (i, 0, 0)),
        ),
        compiler_params=pltpu.CompilerParams(
            dimension_semantics=("parallel",),
            vmem_limit_bytes=32 * 1024 * 1024),
    )(qkv, tables)


# ----------------------------------------------------------------------------
# Grid-tiled Pallas matmul (f32 accumulator scratch, lane-aligned tiles).
# ----------------------------------------------------------------------------
def _matmul_kernel(x_ref, w_ref, o_ref, acc_ref):
    @pl.when(pl.program_id(2) == 0)
    def _():
        acc_ref[...] = jnp.zeros_like(acc_ref)
    acc_ref[...] += jnp.dot(x_ref[...], w_ref[...],
                            preferred_element_type=jnp.float32)
    @pl.when(pl.program_id(2) == pl.num_programs(2) - 1)
    def _():
        o_ref[...] = acc_ref[...].astype(o_ref.dtype)


def _matmul_bias_kernel(x_ref, w_ref, b_ref, o_ref, acc_ref):
    @pl.when(pl.program_id(2) == 0)
    def _():
        acc_ref[...] = jnp.zeros_like(acc_ref)
    acc_ref[...] += jnp.dot(x_ref[...], w_ref[...],
                            preferred_element_type=jnp.float32)
    @pl.when(pl.program_id(2) == pl.num_programs(2) - 1)
    def _():
        o_ref[...] = (acc_ref[...] + b_ref[...].astype(jnp.float32)).astype(o_ref.dtype)


def _pick_tile(dim, preferred, granularity):
    if dim <= preferred:
        return dim                                   # full extent (always legal)
    for t in range(preferred, granularity - 1, -granularity):
        if dim % t == 0:
            return t
    return dim                                       # fall back to full extent


def pallas_linear(x2d, w, b=None):
    M, K = x2d.shape
    _, N = w.shape
    tm = _pick_tile(M, 256, 8)
    tk = _pick_tile(K, 512, 128)
    tn = _pick_tile(N, 256, 128)
    grid = (M // tm, N // tn, K // tk)

    in_specs = [pl.BlockSpec((tm, tk), lambda i, j, k: (i, k)),
                pl.BlockSpec((tk, tn), lambda i, j, k: (k, j))]
    args = (x2d, w)
    kernel = _matmul_kernel
    if b is not None:
        in_specs.append(pl.BlockSpec((1, tn), lambda i, j, k: (0, j)))
        args = (x2d, w, b)
        kernel = _matmul_bias_kernel

    return pl.pallas_call(
        kernel,
        out_shape=jax.ShapeDtypeStruct((M, N), x2d.dtype),
        grid_spec=pltpu.PrefetchScalarGridSpec(
            num_scalar_prefetch=0,
            grid=grid,
            in_specs=in_specs,
            out_specs=pl.BlockSpec((tm, tn), lambda i, j, k: (i, j)),
            scratch_shapes=[pltpu.VMEM((tm, tn), jnp.float32)]),
        compiler_params=pltpu.CompilerParams(
            dimension_semantics=("parallel", "parallel", "arbitrary")),
    )(*args)


# ----------------------------------------------------------------------------
# Module wrapper mirroring the PyTorch MultiHeadAttention forward.
# ----------------------------------------------------------------------------
class MultiHeadAttention:
    def __init__(self, emb_dim, n_head, seq_len, key):
        self.emb_dim = emb_dim
        self.n_head = n_head
        self.head_dim = emb_dim // n_head
        self.scaling = self.head_dim ** (-0.5)

        k1, k2, k3 = jax.random.split(key, 3)
        bound = 1.0 / math.sqrt(emb_dim)
        # Weights stored as (in, out) so forward is x @ W (+ b).
        self.w_qkv = jax.random.uniform(k1, (emb_dim, 3 * emb_dim), jnp.float32,
                                        -bound, bound)
        self.w_out = jax.random.uniform(k2, (emb_dim, emb_dim), jnp.float32,
                                        -bound, bound)
        self.b_out = jax.random.uniform(k3, (1, emb_dim), jnp.float32,
                                        -bound, bound)

        self.rope_tables, self._rope_raw = build_rope_tables(
            seq_len, self.head_dim, n_head, self.scaling)    # f32, kept f32
        self._roll_mode = _probe_roll_mode()
        self._prefer_multi_step = _prefer_multi_step_grid()

    def __call__(self, x, mask=None):
        # TODO(synk): mask path (masked_fill) not implemented in the fused kernel;
        #             the original call sites use mask=None.
        B, N, C = x.shape
        dtype = x.dtype
        itemsize = jnp.dtype(dtype).itemsize

        qkv = pallas_linear(x.reshape(B * N, C), self.w_qkv.astype(dtype))  # (B*N, 3C)
        qkv = qkv.reshape(B, N, 3 * C)          # free reshape — no XLA transpose

        tb = _pick_batch_block(B, N, C, self.n_head, itemsize,
                               self._prefer_multi_step)
        o = fused_rope_attention(qkv, self.rope_tables, n_head=self.n_head,
                                 batch_block=tb, roll_mode=self._roll_mode)  # (B, N, C)

        out = pallas_linear(o.reshape(B * N, C), self.w_out.astype(dtype),
                            self.b_out.astype(dtype))
        return out.reshape(B, N, C)


# ----------------------------------------------------------------------------
# Pure-JAX reference mirroring the PyTorch forward (correctness check).
# ----------------------------------------------------------------------------
def rope2d_ref(x, x_sin, x_cos, y_sin, y_cos, emb_half):
    def rot(a):
        return jnp.stack([-a[..., 1::2], a[..., ::2]], axis=-1).reshape(a.shape)

    xa = x[..., :emb_half]
    ya = x[..., emb_half:]
    xa = xa * x_cos + rot(xa) * x_sin
    ya = ya * y_cos + rot(ya) * y_sin
    return jnp.concatenate([xa, ya], axis=-1)


def mha_reference(x, mod):
    B, N, C = x.shape
    H, D = mod.n_head, mod.head_dim
    qkv = x @ mod.w_qkv
    qkv = qkv.reshape(B, N, 3, H, D).transpose(2, 0, 3, 1, 4)
    q, k, v = qkv[0], qkv[1], qkv[2]
    x_sin, x_cos, y_sin, y_cos = mod._rope_raw
    q = rope2d_ref(q, x_sin, x_cos, y_sin, y_cos, D // 2)
    k = rope2d_ref(k, x_sin, x_cos, y_sin, y_cos, D // 2)
    w = jnp.einsum('bhqd,bhkd->bhqk', q, k) * mod.scaling
    w = jax.nn.softmax(w, axis=-1)
    o = jnp.einsum('bhqk,bhkd->bhqd', w, v)
    o = o.transpose(0, 2, 1, 3).reshape(B, N, C)
    return o @ mod.w_out + mod.b_out


if __name__ == "__main__":
    B = 2
    n_head = 4
    emb_dim = 128                       # head_dim = 32 -> C = 128 lanes (lane-dense)
    grid_side = 4
    seq_len = grid_side * grid_side + 1  # 17 = CLS + 4x4 patch grid

    key = jax.random.PRNGKey(0)
    kx, kw = jax.random.split(key)
    x = jax.random.normal(kx, (B, seq_len, emb_dim), dtype=jnp.float32)

    mha = MultiHeadAttention(emb_dim, n_head, seq_len, kw)
    out = jax.block_until_ready(mha(x))

    ref = mha_reference(x, mha)
    assert out.shape == (B, seq_len, emb_dim) and out.dtype == x.dtype
    max_err = float(jnp.max(jnp.abs(out - ref)))
    assert jnp.allclose(out, ref, atol=3e-2, rtol=3e-2), \
        f"mismatch vs reference, max abs diff = {max_err}"

    print("KERNEL_OK")
</pallas_src>

<mosaic_0001>
module attributes {stable_mosaic.version = 11 : i64} {
  func.func @kern(%arg0: memref<8x128xf32, #tpu.memory_space<vmem>>, %arg1: memref<8x128xf32, #tpu.memory_space<vmem>>) attributes {dimension_semantics = [], scalar_prefetch = 0 : i64, scratch_operands = 0 : i64, tpu.core_type = #tpu.core_type<tc>} {
    %c0 = arith.constant 0 : index
    %c0_0 = arith.constant 0 : index
    %0 = vector.load %arg0[%c0, %c0_0] : memref<8x128xf32, #tpu.memory_space<vmem>>, vector<8x128xf32>
    %c1_i32 = arith.constant 1 : i32
    %1 = tpu.dynamic_rotate %0 by %c1_i32 dim 1 : vector<8x128xf32>, i32 -> vector<8x128xf32>
    %c0_1 = arith.constant 0 : index
    %c0_2 = arith.constant 0 : index
    %2 = vector.load %arg1[%c0_1, %c0_2] : memref<8x128xf32, #tpu.memory_space<vmem>>, vector<8x128xf32>
    tpu.vector_store %arg1[%c0_1, %c0_2], %1 {strides = array<i32>} : memref<8x128xf32, #tpu.memory_space<vmem>>, vector<8x128xf32>,
    return
  }
}

module attributes {stable_mosaic.version = 11 : i64} {
  func.func @_matmul_kernel(%arg0: i32, %arg1: i32, %arg2: i32, %arg3: memref<34x128xf32, #tpu.memory_space<vmem>>, %arg4: memref<128x128xf32, #tpu.memory_space<vmem>>, %arg5: memref<34x128xf32, #tpu.memory_space<vmem>>, %arg6: memref<34x128xf32, #tpu.memory_space<vmem>>) attributes {dimension_semantics = [#tpu.dimension_semantics<parallel>, #tpu.dimension_semantics<parallel>, #tpu.dimension_semantics<arbitrary>], iteration_bounds = array<i64: 1, 3, 1>, scalar_prefetch = 0 : i64, scratch_operands = 1 : i64, tpu.core_type = #tpu.core_type<tc>, window_params = [{transform_indices = @transform_0, window_bounds = array<i64: 34, 128>}, {transform_indices = @transform_1, window_bounds = array<i64: 128, 128>}, {transform_indices = @transform_2, window_bounds = array<i64: 34, 128>}]} {
    %c0_i32 = arith.constant 0 : i32
    %0 = arith.cmpi eq, %arg2, %c0_i32 : i32
    %1 = arith.extui %0 : i1 to i32
    %c0_i32_0 = arith.constant 0 : i32
    %2 = arith.cmpi ne, %1, %c0_i32_0 : i32
    scf.if %2 {
      %cst_10 = arith.constant 0.000000e+00 : f32
      %12 = vector.broadcast %cst_10 : f32 to vector<34x128xf32>
      %c0_11 = arith.constant 0 : index
      %c0_12 = arith.constant 0 : index
      %13 = vector.load %arg6[%c0_11, %c0_12] : memref<34x128xf32, #tpu.memory_space<vmem>>, vector<34x128xf32>
      tpu.vector_store %arg6[%c0_11, %c0_12], %12 {strides = array<i32>} : memref<34x128xf32, #tpu.memory_space<vmem>>, vector<34x128xf32>,
    } else {
    }
    %c0 = arith.constant 0 : index
    %c0_1 = arith.constant 0 : index
    %3 = vector.load %arg6[%c0, %c0_1] : memref<34x128xf32, #tpu.memory_space<vmem>>, vector<34x128xf32>
    %c0_2 = arith.constant 0 : index
    %c0_3 = arith.constant 0 : index
    %4 = vector.load %arg3[%c0_2, %c0_3] : memref<34x128xf32, #tpu.memory_space<vmem>>, vector<34x128xf32>
    %c0_4 = arith.constant 0 : index
    %c0_5 = arith.constant 0 : index
    %5 = vector.load %arg4[%c0_4, %c0_5] : memref<128x128xf32, #tpu.memory_space<vmem>>, vector<128x128xf32>
    %cst = arith.constant dense<0.000000e+00> : vector<34x128xf32>
    %6 = tpu.matmul %4, %5, %cst {dimension_numbers = #tpu.dot_dimension_numbers<[1], [0], [0], [1], [0, 0, 1, 1], [], []>} : vector<34x128xf32>, vector<128x128xf32>, vector<34x128xf32> -> vector<34x128xf32>
    %7 = arith.addf %3, %6 : vector<34x128xf32>
    %c0_6 = arith.constant 0 : index
    %c0_7 = arith.constant 0 : index
    %8 = vector.load %arg6[%c0_6, %c0_7] : memref<34x128xf32, #tpu.memory_space<vmem>>, vector<34x128xf32>
    tpu.vector_store %arg6[%c0_6, %c0_7], %7 {strides = array<i32>} : memref<34x128xf32, #tpu.memory_space<vmem>>, vector<34x128xf32>,
    %c0_i32_8 = arith.constant 0 : i32
    %9 = arith.cmpi eq, %arg2, %c0_i32_8 : i32
    %10 = arith.extui %9 : i1 to i32
    %c0_i32_9 = arith.constant 0 : i32
    %11 = arith.cmpi ne, %10, %c0_i32_9 : i32
    scf.if %11 {
      %c0_10 = arith.constant 0 : index
      %c0_11 = arith.constant 0 : index
      %12 = vector.load %arg6[%c0_10, %c0_11] : memref<34x128xf32, #tpu.memory_space<vmem>>, vector<34x128xf32>
      %c0_12 = arith.constant 0 : index
      %c0_13 = arith.constant 0 : index
      %13 = vector.load %arg5[%c0_12, %c0_13] : memref<34x128xf32, #tpu.memory_space<vmem>>, vector<34x128xf32>
      tpu.vector_store %arg5[%c0_12, %c0_13], %12 {strides = array<i32>} : memref<34x128xf32, #tpu.memory_space<vmem>>, vector<34x128xf32>,
    } else {
    }
    return
  }
  func.func @transform_0(%arg0: i32, %arg1: i32, %arg2: i32) -> (i32, i32) {
    %c0_i32 = arith.constant 0 : i32
    return %arg0, %arg2 : i32, i32
  }
  func.func @transform_1(%arg0: i32, %arg1: i32, %arg2: i32) -> (i32, i32) {
    %c0_i32 = arith.constant 0 : i32
    return %arg2, %arg1 : i32, i32
  }
  func.func @transform_2(%arg0: i32, %arg1: i32, %arg2: i32) -> (i32, i32) {
    %c0_i32 = arith.constant 0 : i32
    return %arg0, %arg1 : i32, i32
  }
}

</mosaic_0001>

<bundles_post_ra>
// kernel: tpu_custom_call.1
= control target key start
LH: loop header
LB: loop body
LE: loop exit
PB: predicated region body
PF: predicated region fallthrough
CT: control target
= control target key end

     0   :  { %6 = vsyncpa [#allocation3], 0  ;;  %s106_s0 = inlined_call_operand.hbm [shape: f32[8,128], index: 0, kind: input, shape index: {}]   ;;  %s107_s1 = inlined_call_operand.hbm [shape: f32[8,128], index: 1, kind: output, shape index: {}]  }
   0x1   :  { %7 = vsyncpa [#allocation4], 0  ;;  %s87_s6 = smov [#allocation2]  }
   0x2   :  { %s14_s7 = sshll.u32 %s87_s6, 4  ;;  %s15_s7 = int_to_ptr.vmem [resolvable:$true] %s14_s7 }
   0x3   :  { %s51_s8 = scalar_lea.vmem %s15_s7, 128  ;;  %p56_p1 = scmp.lt.s32.totalorder %s15_s7, %s15_s7 }
   0x4   :  { %p52_p0 = scmp.ne.s32.totalorder %s15_s7, %s51_s8  ;;  %p57_p2 = scmp.lt.s32.totalorder %s51_s8, %s51_s8 }
   0x6   :  { %p58_p3 = por %p57_p2, %p56_p1 }
   0x8   :  { %p59_p4 = pnand %p58_p3, %p52_p0 }
   0xa   :  { %62 = shalt.err (!%p59_p4)
}
   0xb   :  { %17 = dma.hbm_to_vmem [thread:$0]  %s106_s0, 128, %s15_s7, [#allocation3]  }
   0xc   :  { %83 = dma.done.wait [#allocation3], 128  }
   0xd   :  { %84 = vsyncadd [#allocation3], 4294967168  ;;  %v21_v0 = vld [vmem:[#allocation2] sm:$0xff]  ;;  %s88_s11 = smov 1   ;;  %s89_s12 = smov [#allocation5]  }
   0xe   :  { %22 = vrot.lane.b32.xlu0 %v21_v0, %s88_s11  ;;  %s31_s13 = sshll.u32 %s89_s12, 4  ;;  %s32_s13 = int_to_ptr.vmem [resolvable:$true] %s31_s13 }
   0xf   :  { %s63_s14 = scalar_lea.vmem %s32_s13, 128  ;;  %p68_p6 = scmp.lt.s32.totalorder %s32_s13, %s32_s13 }
  0x10   :  { %p64_p5 = scmp.ne.s32.totalorder %s32_s13, %s63_s14  ;;  %p69_p7 = scmp.lt.s32.totalorder %s63_s14, %s63_s14 }
  0x12   :  { %p70_p8 = por %p69_p7, %p68_p6 }
  0x14   :  { %p71_p9 = pnand %p70_p8, %p64_p5 }
  0x80   :  { %v23_v1 = vpop.permute.xlu0 %22 }
  0x81   :  { %24 = vst [vmem:[#allocation5] sm:$0xff] %v23_v1 }
  0x82   :  { %74 = shalt.err (!%p71_p9)
}
  0x83   :  { %34 = dma.vmem_to_hbm [thread:$0]  %s32_s13, 128, %s107_s1, [#allocation4]  }
  0x84   :  { %85 = dma.done.wait [#allocation4], 128  }
  0x85   :  { %86 = vsyncadd [#allocation4], 4294967168 }
  0x86   :  { %38 = vsyncpa [#allocation3], 1 }
  0x87   :  { %39 = vsyncpa [#allocation4], 1 }

// kernel: tpu_custom_call.1
= control target key start
LH: loop header
LB: loop body
LE: loop exit
PB: predicated region body
PF: predicated region fallthrough
CT: control target
= control target key end

     0   :  { %7 = vsyncpa [#allocation4], 0  ;;  %s1085_s0 = inlined_call_operand.hbm [shape: f32[34,128], index: 0, kind: input, shape index: {}]   ;;  %s1086_s1 = inlined_call_operand.hbm [shape: f32[128,384], index: 1, kind: input, shape index: {}]   ;;  %s1087_s2 = inlined_call_operand.hbm [shape: f32[34,384], index: 2, kind: output, shape index: {}]  }
   0x1   :  { %8 = vsyncpa [#allocation7], 0 }
   0x2   :  { %10 = vsyncpa [#allocation7 + $0x1], 0 }
   0x3   :  { %11 = vsyncpa [#allocation5], 0 }
   0x4   :  { %13 = vsyncpa [#allocation5 + $0x1], 0  ;;  %s845_s9 = smov 0   ;;  %s847_s10 = smov 0  }
   0x5   :  { %s849_s11 = smov 0   ;;  %s851_s12 = smov 0  }
   0x6   :  { %s853_s13 = smov 0   ;;  %s855_s14 = smov 0  }
   0x7 LB: > { %s484_s15 = sadd.s32 4294967295, %s817_s14   ;;  %s485_s16 = sadd.s32 4294967294, %s817_s14   ;;  %s817_s14 = sphi %s855_s14, %s19_s14   ;;  %s813_s13 = sphi %s853_s13, %s1110_s13   ;;  %s809_s12 = sphi %s851_s12, %s1109_s12   ;;  %s805_s11 = sphi %s849_s11, %s1108_s11   ;;  %s801_s10 = sphi %s847_s10, %s1107_s10   ;;  %s797_s9 = sphi %s845_s9, %s1106_s9  }
   0x8   : > { %p82_p0 = scmp.ne.s32.totalorder %s805_s11, %s801_s10  ;;  %p83_p1 = scmp.eq.s32.totalorder %s817_s14, 0 }
   0x9   : > { %p88_p2 = scmp.ne.s32.totalorder %s801_s10, %s797_s9  ;;  %p882_p3 = scmp.eq.s32.totalorder %s484_s15, 0 }
   0xa   : > { %p886_p4 = por %p83_p1, %p82_p0  ;;  %p114_p5 = scmp.eq.s32.totalorder %s484_s15, 2 }
   0xb   : > { %p892_p6 = por %p882_p3, %p88_p2  ;;  %p120_p7 = scmp.eq.s32.totalorder %s485_s16, 2 }
   0xc   : > { %p896_p8 = por %p114_p5, %p82_p0  ;;  %p486_p9 = scmp.ge.s32.totalorder %s817_s14, 1 }
   0xd   : > { %s1094_s19 = scalar_select %p892_p6, 1, 0 }
   0xe   : > { %s1095_s20 = scalar_select %p896_p8, 1, 0 }
   0xf   : > { %p901_p10 = por %p120_p7, %p88_p2  ;;  %p127_p11 = scmp.lt.s32.totalorder %s817_s14, 4 }
  0x10   : > { %s819_s23 = smov [#allocation3]   ;;  %p619_p0 = scmp.lt.s32.totalorder %s817_s14, 3 }
  0x11   : > { %s1096_s21 = scalar_select %p901_p10, 1, 0 }
  0x12   : > { %p906_p12 = pnand %p486_p9, %p127_p11  ;;  %s143_s24 = sshll.u32 %s819_s23, 4  ;;  %s144_s24 = int_to_ptr.vmem [resolvable:$true] %s143_s24 }
  0x13   : > { %1097 = sst [smem:[#allocation12_spill]] %s1096_s21  ;;  %p921_p2 = pnand %p619_p0, %p886_p4 }
  0x14   : > { %p606_p13 = pneg %p906_p12  ;;  %s34_s27 = sadd.s32 1, %s813_s13 }
  0x15   : > { %s690_s28 = scalar_lea.vmem %s144_s24, 640  ;;  %p698_p10 = scmp.lt.s32.totalorder %s144_s24, %s144_s24 }
  0x16   : > { %p915_p1 = pnand %p606_p13, %p882_p3  ;;  %p691_p7 = scmp.ne.s32.totalorder %s144_s24, %s690_s28 }
  0x17   : > { %p699_p8 = scmp.lt.s32.totalorder %s690_s28, %s690_s28 }
  0x18   : > { %p681_p5 = pneg %p915_p1 }
  0x19   : > { %p700_p6 = por %p699_p8, %p698_p10 }
  0x1a   : > { %p693_p9 = pnand %p691_p7, %p681_p5 }
  0x1c   : > { %p694_p11 = pneg %p693_p9 }
  0x1e   : > { %p701_p13 = pnand %p700_p6, %p694_p11 }
  0x20   : > { %704 = shalt.err (!%p701_p13)
}
  0x21   : > { %s1091_s29 = smov 128   ;;  %s821_s30 = smov 8  }
  0x22   : > { %609 = dma.hbm_to_vmem [thread:$0]  (!%p915_p1), %s1085_s0, 640, %s144_s24, [#allocation4], %s1091_s29, %s1091_s29, %s821_s30  }
  0x23   : > { %p36_p4 = scmp.ge.s32.totalorder %s34_s27, 3  ;;  %s75_s5 = sadd.s32 1, %s805_s11 }
  0x24   : > { %s157_s6 = sand.u32 1, %s805_s11   ;;  %s490_s15 = sshll.u32 %s813_s13, 7 }
  0x25   : > { %s1112_s27 = smov (%p36_p4, %s34_s27), 0  ;;  %s489_s7 = sshll.u32 %s157_s6, 7 }
  0x26   : > { %s71_s8 = ssub.s32 %s813_s13, %s1112_s27  ;;  %s169_s23 = scalar_lea.hbm %s1086_s1, %s490_s15 }
  0x27   : > { %p73_p6 = scmp.eq.s32.totalorder %s71_s8, 0  ;;  %s161_s25 = scalar_lea.vmem [#allocation6], %s489_s7 }
  0x28   : > { %s170_s28 = sshll.u32 %s161_s25, 4  ;;  %s158_s24 = scalar_lea.sflag [#allocation7], %s157_s6  ;;  %s171_s28 = int_to_ptr.vmem [resolvable:$true] %s170_s28 }
  0x29   : > { %s947_s21 = scalar_select %p73_p6, %s805_s11, %s75_s5  }
  0x2a   : > { %p707_p8 = pneg %p921_p2  ;;  %s718_s3 = scalar_lea.vmem %s171_s28, 2048 }
  0x2b   : > { %p719_p10 = scmp.ne.s32.totalorder %s171_s28, %s718_s3  ;;  %s822_s4 = smov [#allocation6]  }
  0x2c   : > { %s723_s29 = sshll.u32 %s822_s4, 4  ;;  %s724_s29 = int_to_ptr.vmem [resolvable:$false] %s723_s29 }
  0x2d   : > { %p721_p0 = pnand %p719_p10, %p707_p8  ;;  %s725_s8 = scalar_lea.vmem %s724_s29, 4096 }
  0x2e   : > { %p726_p5 = scmp.lt.s32.totalorder %s171_s28, %s724_s29  ;;  %p727_p7 = scmp.lt.s32.totalorder %s725_s8, %s718_s3 }
  0x2f   : > { %p722_p1 = pneg %p721_p0 }
  0x30   : > { %p728_p9 = por %p727_p7, %p726_p5 }
  0x32   : > { %p729_p11 = pnand %p728_p9, %p722_p1 }
  0x34   : > { %732 = shalt.err (!%p729_p11)
}
  0x35   : > { %s823_s7 = smov 384   ;;  %s1101_s5 = smov 128  }
  0x36   : > { %613 = dma.hbm_to_vmem [thread:$0]  (!%p921_p2), %s169_s23, 2048, %s171_s28, %s158_s24, %s823_s7, %s1101_s5, %s821_s30  }
  0x37   : > { %182 = sbr.rel (%p906_p12) target bundleno = 321 (0x141), region = 28 }
  0x3c   : > { %784 = dma.done.wait (%p882_p3), [#allocation4], 640  }
  0x3d   : > { %786 = vsyncadd (%p882_p3), [#allocation4], 4294966656  ;;  %s962_s29 = sand.u32 1, %s801_s10   ;;  %p1102_p2 = scmp.ne.s32.totalorder %s1094_s19, 0 }
  0x3e   : > { %s493_s6 = sshll.u32 %s962_s29, 7  ;;  %s189_s26 = scalar_lea.sflag [#allocation7], %s962_s29 }
  0x3f   : > { %s966_s15 = scalar_lea.vmem [#allocation6], %s493_s6 }
  0x40   : > { %788 = dma.done.wait (%p1102_p2), %s189_s26, 2048  }
  0x41   : > { %790 = vsyncadd (%p1102_p2), %s189_s26, 4294965248  ;;  %v824_v0 = vmov 0.0   ;;  %vm825_vm0 = vmmov 0   ;;  %v250_v1 = vld [vmem:[%s966_s15 + $0x78] sm:$0xff]  ;;  %v249_v2 = vld [vmem:[%s966_s15 + $0x70] sm:$0xff]  ;;  %s597_s17 = smul.u32 40, %s962_s29 }
  0x42   : > { %518 = vmatprep.subr.mxu0 %v824_v0  ;;  %224 = vst [vmem:[#allocation2 + $0x18] sm:$0x3] %v824_v0  ;;  %565 = vmatprep.subr.mxu1 %v824_v0  ;;  %v248_v3 = vld [vmem:[%s966_s15 + $0x68] sm:$0xff]  ;;  %v247_v4 = vld [vmem:[%s966_s15 + $0x60] sm:$0xff]  ;;  %v246_v5 = vld [vmem:[%s966_s15 + $0x58] sm:$0xff]  ;;  %s494_s22 = sshll.u32 %s809_s12, 7 }
  0x43   : > { %550 = vmatprep.mubr.msk.f32.mxu0 %vm825_vm0, %v824_v0  ;;  %559 = vmatprep.mubr.msk.f32.mxu1 %vm825_vm0, %v824_v0  ;;  %v245_v6 = vld [vmem:[%s966_s15 + $0x50] sm:$0xff]  ;;  %v244_v7 = vld [vmem:[%s966_s15 + $0x48] sm:$0xff]  ;;  %v243_v8 = vld [vmem:[%s966_s15 + $0x40] sm:$0xff]  ;;  %s212_s19 = scalar_lea.vmem [#allocation8], %s597_s17  ;;  %s1036_s23 = scalar_lea.hbm %s1087_s2, %s494_s22 }
  0x44   : > { %519 = vmatpush3.msra.mxu0 %v250_v1  ;;  %581 = vmatpush3.msra.mxu1 %v250_v1  ;;  %v242_v9 = vld [vmem:[%s966_s15 + $0x38] sm:$0xff]  ;;  %v241_v10 = vld [vmem:[%s966_s15 + $0x30] sm:$0xff]  ;;  %v240_v11 = vld [vmem:[%s966_s15 + $0x28] sm:$0xff]  ;;  %s380_s30 = sshll.u32 %s212_s19, 4  ;;  %s365_s25 = scalar_lea.sflag [#allocation5], %s962_s29  ;;  %s1038_s30 = int_to_ptr.vmem [resolvable:$true] %s380_s30 }
  0x45   : > { %520 = vmatprep.subr.mxu0 %v824_v0  ;;  %566 = vmatprep.subr.mxu1 %v824_v0  ;;  %v239_v12 = vld [vmem:[%s966_s15 + $0x20] sm:$0xff]  ;;  %v238_v13 = vld [vmem:[%s966_s15 + $0x18] sm:$0xff]  ;;  %v237_v14 = vld [vmem:[%s966_s15 + $0x10] sm:$0xff]  ;;  %s733_s28 = scalar_lea.vmem %s1038_s30, 640  ;;  %p1103_p12 = scmp.ne.s32.totalorder %s1095_s20, 0 }
  0x46   : > { %521 = vmatpush3.msra.mxu0 %v249_v2  ;;  %582 = vmatpush3.msra.mxu1 %v249_v2  ;;  %v236_v15 = vld [vmem:[%s966_s15 + $0x8] sm:$0xff]  ;;  %v235_v16 = vld [vmem:[%s966_s15] sm:$0xff]  ;;  %v230_v17 = vld [vmem:[#allocation3] sm:$0xff]  ;;  %p734_p3 = scmp.ne.s32.totalorder %s1038_s30, %s733_s28  ;;  %s826_s12 = smov [#allocation8]  }
  0x47   : > { %522 = vmatprep.subr.mxu0 %v824_v0  ;;  %567 = vmatprep.subr.mxu1 %v824_v0  ;;  %v233_v18 = vld [vmem:[#allocation3 + $0x18] sm:$0xff]  ;;  %v231_v19 = vld [vmem:[#allocation3 + $0x8] sm:$0xff]  ;;  %v234_v20 = vld [vmem:[#allocation3 + $0x20] sm:$0x3]  ;;  %s737_s24 = sshll.u32 %s826_s12, 4  ;;  %s738_s24 = int_to_ptr.vmem [resolvable:$false] %s737_s24 }
  0x48   : > { %523 = vmatpush3.msra.mxu0 %v248_v3  ;;  %583 = vmatpush3.msra.mxu1 %v248_v3  ;;  %v232_v21 = vld [vmem:[#allocation3 + $0x10] sm:$0xff]  ;;  %p735_p13 = pnand %p734_p3, %p1103_p12  ;;  %s739_s3 = scalar_lea.vmem %s738_s24, 1280 }
  0x49   : > { %524 = vmatprep.subr.mxu0 %v824_v0  ;;  %568 = vmatprep.subr.mxu1 %v824_v0  ;;  %v229_v26 = vld [vmem:[#allocation2 + $0x18] sm:$0x3]  ;;  %p740_p6 = scmp.lt.s32.totalorder %s1038_s30, %s738_s24  ;;  %p741_p8 = scmp.lt.s32.totalorder %s739_s3, %s733_s28 }
  0x4a   : > { %525 = vmatpush3.msra.mxu0 %v247_v4  ;;  %584 = vmatpush3.msra.mxu1 %v247_v4  ;;  %p736_p4 = pneg %p735_p13 }
  0x4b   : > { %526 = vmatprep.subr.mxu0 %v824_v0  ;;  %569 = vmatprep.subr.mxu1 %v824_v0  ;;  %p742_p10 = por %p741_p8, %p740_p6 }
  0x4c   : > { %527 = vmatpush3.msra.mxu0 %v246_v5  ;;  %585 = vmatpush3.msra.mxu1 %v246_v5 }
  0x4d   : > { %528 = vmatprep.subr.mxu0 %v824_v0  ;;  %570 = vmatprep.subr.mxu1 %v824_v0  ;;  %p743_p0 = pnand %p742_p10, %p736_p4 }
  0x4e   : > { %529 = vmatpush3.msra.mxu0 %v245_v6  ;;  %586 = vmatpush3.msra.mxu1 %v245_v6 }
  0x4f   : > { %530 = vmatprep.subr.mxu0 %v824_v0  ;;  %571 = vmatprep.subr.mxu1 %v824_v0 }
  0x50   : > { %531 = vmatpush3.msra.mxu0 %v244_v7  ;;  %587 = vmatpush3.msra.mxu1 %v244_v7 }
  0x51   : > { %532 = vmatprep.subr.mxu0 %v824_v0  ;;  %572 = vmatprep.subr.mxu1 %v824_v0 }
  0x52   : > { %533 = vmatpush3.msra.mxu0 %v243_v8  ;;  %588 = vmatpush3.msra.mxu1 %v243_v8 }
  0x53   : > { %534 = vmatprep.subr.mxu0 %v824_v0  ;;  %573 = vmatprep.subr.mxu1 %v824_v0 }
  0x54   : > { %535 = vmatpush3.msra.mxu0 %v242_v9  ;;  %589 = vmatpush3.msra.mxu1 %v242_v9 }
  0x55   : > { %536 = vmatprep.subr.mxu0 %v824_v0  ;;  %574 = vmatprep.subr.mxu1 %v824_v0 }
  0x56   : > { %537 = vmatpush3.msra.mxu0 %v241_v10  ;;  %590 = vmatpush3.msra.mxu1 %v241_v10 }
  0x57   : > { %538 = vmatprep.subr.mxu0 %v824_v0  ;;  %575 = vmatprep.subr.mxu1 %v824_v0 }
  0x58   : > { %539 = vmatpush3.msra.mxu0 %v240_v11  ;;  %591 = vmatpush3.msra.mxu1 %v240_v11 }
  0x59   : > { %540 = vmatprep.subr.mxu0 %v824_v0  ;;  %576 = vmatprep.subr.mxu1 %v824_v0 }
  0x5a   : > { %541 = vmatpush3.msra.mxu0 %v239_v12  ;;  %592 = vmatpush3.msra.mxu1 %v239_v12 }
  0x5b   : > { %542 = vmatprep.subr.mxu0 %v824_v0  ;;  %577 = vmatprep.subr.mxu1 %v824_v0 }
  0x5c   : > { %543 = vmatpush3.msra.mxu0 %v238_v13  ;;  %593 = vmatpush3.msra.mxu1 %v238_v13 }
  0x5d   : > { %544 = vmatprep.subr.mxu0 %v824_v0  ;;  %578 = vmatprep.subr.mxu1 %v824_v0 }
  0x5e   : > { %545 = vmatpush3.msra.mxu0 %v237_v14  ;;  %594 = vmatpush3.msra.mxu1 %v237_v14 }
  0x5f   : > { %546 = vmatprep.subr.mxu0 %v824_v0  ;;  %579 = vmatprep.subr.mxu1 %v824_v0 }
  0x60   : > { %547 = vmatpush3.msra.mxu0 %v236_v15  ;;  %595 = vmatpush3.msra.mxu1 %v236_v15 }
  0x61   : > { %548 = vmatprep.subr.mxu0 %v824_v0  ;;  %580 = vmatprep.subr.mxu1 %v824_v0 }
  0x62   : > { %549 = vmatpush3.msra.mxu0 %v235_v16  ;;  %596 = vmatpush3.msra.mxu1 %v235_v16 }
  0x63   : > { %551 = vmatmul.mubr.f32.vlgmr.msra.gmra.mxu0 %v230_v17  ;;  %560 = vmatmul.mubr.f32.vlgmr.msra.gmra.mxu1 %v233_v18 }
  0x64   : > { %553 = vmatprep.mubr.msk.f32.mxu0 %vm825_vm0, %v824_v0  ;;  %562 = vmatprep.mubr.msk.f32.mxu1 %vm825_vm0, %v824_v0 }
  0x67   : > { %554 = vmatmul.mubr.f32.gmra.mxu0 %v231_v19  ;;  %563 = vmatmul.mubr.f32.gmra.mxu1 %v234_v20 }
  0x68   : > { %556 = vmatprep.mubr.msk.f32.mxu0 %vm825_vm0, %v824_v0 }
  0x6b   : > { %557 = vmatmul.mubr.f32.gmra.mxu0 %v232_v21 }
 0x123   : > { %v317_v22 = vpop.f32.mrf.mxu0  ;;  %v332_v23 = vpop.f32.mrf.mxu1 }
 0x124   : > { %359 = vst [vmem:[%s212_s19] sm:$0xff] %v317_v22  ;;  %362 = vst [vmem:[%s212_s19 + $0x18] sm:$0xff] %v332_v23 }
 0x125   : > { %v552_v24 = vpop.f32.mrf.mxu0  ;;  %v561_v25 = vpop.f32.mrf.mxu1 }
 0x127   : > { %v322_v27 = vpop.f32.mrf.mxu0  ;;  %v337_v28 = vpop.f32.mrf.mxu1 }
 0x128   : > { %v345_v29 = vadd.f32 %v337_v28, %v229_v26  ;;  %360 = vst [vmem:[%s212_s19 + $0x8] sm:$0xff] %v322_v27 }
 0x129   : > { %v555_v30 = vpop.f32.mrf.mxu0  ;;  %v564_v31 = vpop.f32.mrf.mxu1 }
 0x12a   : > { %350 = vst [vmem:[#allocation2 + $0x18] sm:$0x3] %v345_v29 }
 0x12b   : > { %v327_v32 = vpop.f32.mrf.mxu0 }
 0x12c   : > { %361 = vst [vmem:[%s212_s19 + $0x10] sm:$0xff] %v327_v32 }
 0x12d   : > { %v558_v33 = vpop.f32.mrf.mxu0 }
 0x131   : > { %v358_v34 = vld [vmem:[#allocation2 + $0x18] sm:$0x3] }
 0x132   : > { %363 = vst [vmem:[%s212_s19 + $0x20] sm:$0x3] %v358_v34 }
 0x133   : > { %746 = shalt.err (!%p743_p0)
}
 0x134   : > { %s747_s4 = scalar_lea.hbm %s1036_s23, 640  ;;  %s751_s5 = scalar_lea.hbm %s1087_s2, 1920 }
 0x135   : > { %p748_p1 = scmp.ne.s32.totalorder %s1036_s23, %s747_s4  ;;  %p752_p9 = scmp.lt.s32.totalorder %s1036_s23, %s1087_s2 }
 0x136   : > { %p753_p11 = scmp.lt.s32.totalorder %s751_s5, %s747_s4 }
 0x137   : > { %p749_p5 = pnand %p748_p1, %p1103_p12 }
 0x138   : > { %p754_p2 = por %p753_p11, %p752_p9 }
 0x139   : > { %p750_p7 = pneg %p749_p5 }
 0x13b   : > { %p755_p3 = pnand %p754_p2, %p750_p7 }
 0x13d   : > { %758 = shalt.err (!%p755_p3)
}
 0x13e   : > { %s827_s15 = smov 128   ;;  %s828_s17 = smov 384  }
 0x13f   : > { %s829_s19 = smov 8  }
 0x140   : > { %604 = dma.vmem_to_hbm [thread:$0]  (%p1103_p12), %s1038_s30, 640, %s1036_s23, %s365_s25, %s827_s15, %s828_s17, %s829_s19  }
 0x141 PF: > { %s1104_s22 = sld [smem:[#allocation12_spill]]  ;;  %p621_p13 = scmp.ge.s32.totalorder %s817_s14, 2 }
 0x142   : > { %s395_s16 = sand.u32 1, %s797_s9  }
 0x143   : > { %s396_s18 = scalar_lea.sflag [#allocation5], %s395_s16 }
 0x147   : > { %p1105_p4 = scmp.ne.s32.totalorder %s1104_s22, 0 }
 0x149   : > { %p615_p6 = pnand %p621_p13, %p1105_p4 }
 0x14b   : > { %p616_p8 = pneg %p615_p6 }
 0x14d   : > { %792 = dma.done.wait (%p616_p8), %s396_s18, 640  }
 0x14e   : > { %794 = vsyncadd (%p616_p8), %s396_s18, 4294966656  ;;  %s19_s14 = sadd.s32 1, %s817_s14   ;;  %s1106_s9 = smov %s801_s10 }
 0x14f   : > { %p16_p10 = scmp.ge.s32.totalorder %s19_s14, 5   ;;  %s1107_s10 = smov %s805_s11 }
 0x150   : > { %s1108_s11 = smov %s947_s21  ;;  %s1109_s12 = smov %s813_s13 }
 0x151   : > { %s1110_s13 = smov %s1112_s27  ;;  %18 = sbr.rel (!%p16_p10) target bundleno = 7 (0x7), region = 87 }
 0x156   :  { %401 = vsyncpa [#allocation4], 1 }
 0x157   :  { %403 = vsyncpa [#allocation4 + $0x1], 1 }
 0x158   :  { %404 = vsyncpa [#allocation7], 1 }
 0x159   :  { %406 = vsyncpa [#allocation7 + $0x1], 1 }
 0x15a   :  { %407 = vsyncpa [#allocation5], 1 }
 0x15b   :  { %409 = vsyncpa [#allocation5 + $0x1], 1 }

</bundles_post_ra>
